<compile_context>
chip_gen: v7x
topology: tpu7x:2x2x1
jax: 0.10.0
libtpu: 0.0.40
codegen_flags: <defaults>
</compile_context>

<pallas_src>
import functools

import jax
import jax.numpy as jnp
from jax.experimental import pallas as pl
from jax.experimental.pallas import tpu as pltpu


def _gem_kernel(p_ref, x_ref, o_ref, acc_ref, *, eps, hw_total, hw_block, mask_hw):
    """One (row_block, hw_block) tile of the GeM reduction.

    p_ref   : SMEM (1,) float32  - learnable GeM exponent.
    x_ref   : VMEM (row_block, hw_block) tile of x viewed as (N*C, H*W).
    o_ref   : VMEM (row_block, 1) output tile (resident across the spatial axis).
    acc_ref : VMEM (row_block, 1) float32 running sum of clamp(x, eps)**p.
    """
    k = pl.program_id(1)
    nk = pl.num_programs(1)

    @pl.when(k == 0)
    def _():
        acc_ref[...] = jnp.zeros_like(acc_ref)

    p = p_ref[0]
    # Compute in float32 regardless of input dtype: v5e has no bf16 VPU/EUP, and
    # f32 accumulation over H*W matches the f32 PyTorch reference numerically.
    x = x_ref[...].astype(jnp.float32)
    # base >= eps > 0, so pow(base, p) == exp(p * log(base)); this avoids the
    # generic traced-exponent jnp.power lowering (extra cmp/select VPU work).
    powed = jnp.exp(p * jnp.log(jnp.maximum(x, eps)))

    if mask_hw:  # static Python bool: only when hw_block does not divide H*W
        # Only the last spatial block can hold out-of-range lanes; keep the
        # iota/compare/select off the hot path of every other block.
        @pl.when(k < nk - 1)
        def _():
            acc_ref[...] += jnp.sum(powed, axis=-1, keepdims=True)

        @pl.when(k == nk - 1)
        def _():
            lane = jax.lax.broadcasted_iota(jnp.int32, powed.shape, 1)
            valid = lane < (hw_total - k * hw_block)
            acc_ref[...] += jnp.sum(jnp.where(valid, powed, 0.0),
                                    axis=-1, keepdims=True)
    else:
        acc_ref[...] += jnp.sum(powed, axis=-1, keepdims=True)

    @pl.when(k == nk - 1)
    def _():
        inv_p = 1.0 / p                              # one scalar divide per row tile
        mean = acc_ref[...] * (1.0 / hw_total)       # mean > 0 (inputs clamped to eps)
        o_ref[...] = jnp.exp(inv_p * jnp.log(mean)).astype(o_ref.dtype)


def _vmem_capacity_bytes():
    """Per-TensorCore VMEM capacity; conservative fallback if the query fails."""
    try:
        cap = int(getattr(pltpu.get_tpu_info(), "vmem_capacity_bytes", 0))
        if cap > 0:
            return cap
    except Exception:
        pass
    return 64 * 1024 * 1024  # v7x per-core size; safe lower bound for v5e/v6e


def _choose_tiles(nc, hw, itemsize, max_hw=4096):
    """Pick (row_block, hw_block, vmem_limit) from the chip's VMEM capacity."""
    vmem_cap = _vmem_capacity_bytes()
    # ~1/8 of VMEM per input block; double-buffering makes that ~1/4, leaving
    # headroom for f32 intermediates and compiler-internal scratch on 64 MiB parts.
    block_budget = max(vmem_cap // 8, 2 * 1024 * 1024)

    # Spatial (reduction) tile: whole H*W when modest, else a large multiple of 128.
    hw_block = hw if hw <= max_hw else max_hw

    # Row tile derived purely from the byte budget, in groups of 8 sublanes.
    g = -(-nc // 8)                                        # row groups of 8
    budget_g = max(block_budget // max(hw_block * itemsize * 8, 1), 1)
    rows_g = min(budget_g, g)
    nblk = -(-g // rows_g)
    # Prefer an even (>=2) row-block count when it is small, so v7x's two
    # TensorCores split the "parallel" axis evenly; costs at most a couple of
    # extra ~0.35us pipeline steps on single-TC v5e/v6e.
    if g >= 2 and nblk % 2 == 1 and nblk <= 8:
        for cand in range(rows_g, 0, -1):
            if (-(-g // cand)) % 2 == 0:
                rows_g = cand
                break
    row_block = rows_g * 8

    block_bytes = row_block * hw_block * itemsize
    vmem_limit = min(4 * block_bytes + 8 * 1024 * 1024, (vmem_cap * 3) // 4)
    vmem_limit = max(vmem_limit, 16 * 1024 * 1024)
    return row_block, hw_block, vmem_limit


def gem_pallas(x, p, eps=1e-6):
    """GeM pooling. x: (N, C, H, W); p: (1,) exponent. Returns (N, C, 1, 1) in x.dtype."""
    N, C, H, W = x.shape
    NC, HW = N * C, H * W
    x2 = x.reshape(NC, HW)                     # free: NCHW is contiguous
    itemsize = x2.dtype.itemsize

    row_block, hw_block, vmem_limit = _choose_tiles(NC, HW, itemsize)
    grid = (pl.cdiv(NC, row_block), pl.cdiv(HW, hw_block))
    mask_hw = (HW % hw_block) != 0
    out_rows = grid[0] * row_block             # row tail handled by the grid, not jnp.pad

    kernel = functools.partial(
        _gem_kernel, eps=float(eps), hw_total=HW, hw_block=hw_block, mask_hw=mask_hw
    )

    cost = pl.CostEstimate(
        flops=4 * NC * HW,
        transcendentals=2 * NC * HW + 2 * NC,   # log+exp per element, log+exp per row
        bytes_accessed=NC * HW * itemsize + NC * itemsize + 4,
    )

    out = pl.pallas_call(
        kernel,
        out_shape=jax.ShapeDtypeStruct((out_rows, 1), x.dtype),
        grid=grid,
        in_specs=[
            pl.BlockSpec(memory_space=pltpu.MemorySpace.SMEM),         # p: f32 scalar
            pl.BlockSpec((row_block, hw_block), lambda i, k: (i, k)),  # x tile
        ],
        out_specs=pl.BlockSpec((row_block, 1), lambda i, k: (i, 0)),
        scratch_shapes=[pltpu.VMEM((row_block, 1), jnp.float32)],
        compiler_params=pltpu.CompilerParams(
            dimension_semantics=("parallel", "arbitrary"),
            vmem_limit_bytes=int(vmem_limit),
        ),
        cost_estimate=cost,
    )(p.astype(jnp.float32), x2)

    return out[:NC].reshape(N, C, 1, 1)


def gem_reference(x, p, eps=1e-6):
    # Pure-JAX reference matching the PyTorch forward (computed in f32).
    pf = p[0].astype(jnp.float32)
    clamped = jnp.maximum(x.astype(jnp.float32), eps)
    powed = jnp.power(clamped, pf)
    mean = jnp.mean(powed, axis=(-2, -1), keepdims=True)
    return jnp.power(mean, 1.0 / pf).astype(x.dtype)


if __name__ == "__main__":
    key = jax.random.PRNGKey(0)
    N, C, H, W = 2, 4, 16, 16
    x = jax.random.normal(key, (N, C, H, W), dtype=jnp.float32)

    # Deterministic parameter init, matching nn.Parameter(torch.ones(1) * p), p=3.
    p = jnp.ones((1,), dtype=jnp.float32) * 3.0
    eps = 1e-6

    out = jax.block_until_ready(gem_pallas(x, p, eps=eps))
    ref = gem_reference(x, p, eps=eps)

    assert out.shape == (N, C, 1, 1), out.shape
    assert jnp.allclose(out, ref, rtol=1e-5, atol=1e-5), (
        f"max err {jnp.max(jnp.abs(out - ref))}"
    )
    print("KERNEL_OK")
</pallas_src>

<mosaic_0001>
module attributes {stable_mosaic.version = 11 : i64} {
  func.func @_gem_kernel(%arg0: i32, %arg1: i32, %arg2: memref<1xf32, #tpu.memory_space<smem>>, %arg3: memref<8x256xf32, #tpu.memory_space<vmem>>, %arg4: memref<8x1xf32, #tpu.memory_space<vmem>>, %arg5: memref<8x1xf32, #tpu.memory_space<vmem>>) attributes {dimension_semantics = [#tpu.dimension_semantics<parallel>, #tpu.dimension_semantics<arbitrary>], iteration_bounds = array<i64: 1, 1>, scalar_prefetch = 0 : i64, scratch_operands = 1 : i64, tpu.core_type = #tpu.core_type<tc>, window_params = [{transform_indices = @transform_0, window_bounds = array<i64: 1>}, {transform_indices = @transform_1, window_bounds = array<i64: 8, 256>}, {transform_indices = @transform_2, window_bounds = array<i64: 8, 1>}]} {
    %c0_i32 = arith.constant 0 : i32
    %0 = arith.cmpi eq, %arg1, %c0_i32 : i32
    %1 = arith.extui %0 : i1 to i32
    %c0_i32_0 = arith.constant 0 : i32
    %2 = arith.cmpi ne, %1, %c0_i32_0 : i32
    scf.if %2 {
      %cst_10 = arith.constant 0.000000e+00 : f32
      %19 = vector.broadcast %cst_10 : f32 to vector<8x1xf32>
      %c0_11 = arith.constant 0 : index
      %c0_12 = arith.constant 0 : index
      %20 = vector.load %arg5[%c0_11, %c0_12] : memref<8x1xf32, #tpu.memory_space<vmem>>, vector<8x1xf32>
      tpu.vector_store %arg5[%c0_11, %c0_12], %19 {strides = array<i32>} : memref<8x1xf32, #tpu.memory_space<vmem>>, vector<8x1xf32>,
    } else {
    }
    %c0 = arith.constant 0 : index
    %3 = memref.load %arg2[%c0] : memref<1xf32, #tpu.memory_space<smem>>
    %c0_1 = arith.constant 0 : index
    %c0_2 = arith.constant 0 : index
    %4 = vector.load %arg3[%c0_1, %c0_2] : memref<8x256xf32, #tpu.memory_space<vmem>>, vector<8x256xf32>
    %cst = arith.constant 9.99999997E-7 : f32
    %5 = vector.broadcast %cst : f32 to vector<8x256xf32>
    %6 = arith.maximumf %4, %5 : vector<8x256xf32>
    %7 = math.log %6 : vector<8x256xf32>
    %8 = vector.broadcast %3 : f32 to vector<8x256xf32>
    %9 = arith.mulf %8, %7 : vector<8x256xf32>
    %10 = math.exp %9 : vector<8x256xf32>
    %c0_3 = arith.constant 0 : index
    %c0_4 = arith.constant 0 : index
    %11 = vector.load %arg5[%c0_3, %c0_4] : memref<8x1xf32, #tpu.memory_space<vmem>>, vector<8x1xf32>
    %cst_5 = arith.constant dense<0.000000e+00> : vector<8xf32>
    %12 = vector.multi_reduction <add>, %10, %cst_5 [1] : vector<8x256xf32> to vector<8xf32>
    %13 = vector.shape_cast %12 : vector<8xf32> to vector<8x1xf32>
    %14 = arith.addf %11, %13 : vector<8x1xf32>
    %c0_6 = arith.constant 0 : index
    %c0_7 = arith.constant 0 : index
    %15 = vector.load %arg5[%c0_6, %c0_7] : memref<8x1xf32, #tpu.memory_space<vmem>>, vector<8x1xf32>
    tpu.vector_store %arg5[%c0_6, %c0_7], %14 {strides = array<i32>} : memref<8x1xf32, #tpu.memory_space<vmem>>, vector<8x1xf32>,
    %c0_i32_8 = arith.constant 0 : i32
    %16 = arith.cmpi eq, %arg1, %c0_i32_8 : i32
    %17 = arith.extui %16 : i1 to i32
    %c0_i32_9 = arith.constant 0 : i32
    %18 = arith.cmpi ne, %17, %c0_i32_9 : i32
    scf.if %18 {
      %cst_10 = arith.constant 1.000000e+00 : f32
      %19 = arith.divf %cst_10, %3 : f32
      %c0_11 = arith.constant 0 : index
      %c0_12 = arith.constant 0 : index
      %20 = vector.load %arg5[%c0_11, %c0_12] : memref<8x1xf32, #tpu.memory_space<vmem>>, vector<8x1xf32>
      %cst_13 = arith.constant 3.906250e-03 : f32
      %21 = vector.broadcast %cst_13 : f32 to vector<8x1xf32>
      %22 = arith.mulf %20, %21 : vector<8x1xf32>
      %23 = math.log %22 : vector<8x1xf32>
      %24 = vector.broadcast %19 : f32 to vector<8x1xf32>
      %25 = arith.mulf %24, %23 : vector<8x1xf32>
      %26 = math.exp %25 : vector<8x1xf32>
      %c0_14 = arith.constant 0 : index
      %c0_15 = arith.constant 0 : index
      %27 = vector.load %arg4[%c0_14, %c0_15] : memref<8x1xf32, #tpu.memory_space<vmem>>, vector<8x1xf32>
      tpu.vector_store %arg4[%c0_14, %c0_15], %26 {strides = array<i32>} : memref<8x1xf32, #tpu.memory_space<vmem>>, vector<8x1xf32>,
    } else {
    }
    return
  }
  func.func @transform_0(%arg0: i32, %arg1: i32) -> i32 {
    %c0_i32 = arith.constant 0 : i32
    %c0_i32_0 = arith.constant 0 : i32
    return %c0_i32 : i32
  }
  func.func @transform_1(%arg0: i32, %arg1: i32) -> (i32, i32) {
    %c0_i32 = arith.constant 0 : i32
    return %arg0, %arg1 : i32, i32
  }
  func.func @transform_2(%arg0: i32, %arg1: i32) -> (i32, i32) {
    %c0_i32 = arith.constant 0 : i32
    %c0_i32_0 = arith.constant 0 : i32
    return %arg0, %c0_i32 : i32, i32
  }
}

</mosaic_0001>

<bundles_post_ra>
// kernel: tpu_custom_call.1
= control target key start
LH: loop header
LB: loop body
LE: loop exit
PB: predicated region body
PF: predicated region fallthrough
CT: control target
= control target key end

     0   :  { %8 = vsyncpa [#allocation5], 0  ;;  %s115_s9 = smov [#allocation4]   ;;  %s153_s0 = inlined_call_operand.<no memory space> [shape: f32[1], index: 0, kind: input, shape index: {}]   ;;  %s154_s1 = inlined_call_operand.hbm [shape: f32[8,256], index: 1, kind: input, shape index: {}]   ;;  %s155_s2 = inlined_call_operand.vmem [shape: f32[8,1], index: 2, kind: output, shape index: {}]  }
   0x1   :  { %s17_s10 = sshll.u32 %s115_s9, 4  ;;  %s91_s13 = scalar_lea.hbm %s154_s1, 256  ;;  %s18_s10 = int_to_ptr.vmem [resolvable:$true] %s17_s10 }
   0x2   :  { %p92_p0 = scmp.ne.s32.totalorder %s154_s1, %s91_s13  ;;  %p95_p1 = scmp.lt.u32.totalorder %s91_s13, %s154_s1 }
   0x4   :  { %p97_p2 = pnand %p95_p1, %p92_p0 }
   0x6   :  { %100 = shalt.err (!%p97_p2)
}
   0x7   :  { %s101_s18 = scalar_lea.vmem %s18_s10, 256  ;;  %p106_p4 = scmp.lt.s32.totalorder %s18_s10, %s18_s10 }
   0x8   :  { %p102_p3 = scmp.ne.s32.totalorder %s18_s10, %s101_s18  ;;  %p107_p5 = scmp.lt.s32.totalorder %s101_s18, %s101_s18 }
   0xa   :  { %p108_p6 = por %p107_p5, %p106_p4 }
   0xc   :  { %p109_p7 = pnand %p108_p6, %p102_p3 }
   0xe   :  { %112 = shalt.err (!%p109_p7)
}
   0xf   :  { %20 = dma.hbm_to_vmem [thread:$0]  %s154_s1, 256, %s18_s10, [#allocation5]  }
  0x10   :  { %113 = dma.done.wait [#allocation5], 256  }
  0x11   :  { %114 = vsyncadd [#allocation5], 4294967040  ;;  %vm28_vm0 = vcmask 7168   ;;  %v39_v0 = vstv %s153_s0  ;;  %v116_v1 = vmov 0.0   ;;  %v31_v2 = vld [vmem:[#allocation4] sm:$0xff]  ;;  %v32_v3 = vld [vmem:[#allocation4 + $0x8] sm:$0xff] }
  0x12   :  { %29 = vst.msk [vmem:[#allocation2] sm:$0xff] %vm28_vm0, %v116_v1  ;;  %77 = vrcp.f32 %v39_v0  ;;  %v33_v4 = vmax.f32 %v31_v2, 1e-06  ;;  %v34_v5 = vmax.f32 %v32_v3, 1e-06 }
  0x14   :  { %79 = vlog2.f32 %v33_v4 }
  0x15   :  { %81 = vlog2.f32 %v34_v5 }
  0x19   :  { %v46_v18 = vld [vmem:[#allocation2] sm:$0xff] }
  0x1c   :  { %v78_v6 = vpop.eup %77 }
  0x1d   :  { %73 = vpush %v78_v6 }
  0x1e   :  { %v80_v7 = vpop.eup %79 }
  0x1f   :  { %v82_v8 = vpop.eup %81  ;;  %v36_v9 = vmul.f32 0.6931472, %v80_v7 }
  0x20   :  { %v38_v10 = vmul.f32 0.6931472, %v82_v8 }
  0x21   :  { %v40_v11 = vmul.f32 %v39_v0, %v36_v9 }
  0x22   :  { %v41_v12 = vmul.f32 %v39_v0, %v38_v10 }
  0x23   :  { %v42_v13 = vmul.f32 1.442695, %v40_v11 }
  0x24   :  { %v44_v14 = vmul.f32 1.442695, %v41_v12 }
  0x25   :  { %83 = vpow2.f32 %v42_v13 }
  0x26   :  { %85 = vpow2.f32 %v44_v14 }
  0x2f   :  { %v84_v15 = vpop.eup %83 }
  0x30   :  { %v86_v16 = vpop.eup %85 }
  0x31   :  { %v47_v17 = vadd.f32 %v86_v16, %v84_v15 }
  0x33   :  { %48 = vadd.xlane.f32.xlu0 %v47_v17 }
  0x4e   :  { %s74_s0 = spop %73 }
  0x4f   :  { %v63_v24 = vstv %s74_s0 }
  0xc0   :  { %v49_v19 = vpop.xlane.xlu0 %48 }
  0xc1   :  { %v50_v20 = vadd.f32 %v49_v19, %v46_v18 }
  0xc3   :  { %52 = vst.msk [vmem:[#allocation2] sm:$0xff] %vm28_vm0, %v50_v20 }
  0xca   :  { %v59_v21 = vld [vmem:[#allocation2] sm:$0xff] }
  0xcb   :  { %v60_v22 = vmul.f32 0.00390625, %v59_v21 }
  0xcd   :  { %87 = vlog2.f32 %v60_v22 }
  0xd7   :  { %v88_v23 = vpop.eup %87 }
  0xd8   :  { %v62_v25 = vmul.f32 0.6931472, %v88_v23 }
  0xda   :  { %v64_v26 = vmul.f32 %v63_v24, %v62_v25 }
  0xdc   :  { %v65_v27 = vmul.f32 1.442695, %v64_v26 }
  0xde   :  { %89 = vpow2.f32 %v65_v27 }
  0xe8   :  { %v90_v28 = vpop.eup %89 }
  0xe9   :  { %67 = vst.msk [vmem:[%s155_s2] sm:$0xff] %vm28_vm0, %v90_v28 }
  0xea   :  { %72 = vsyncpa [#allocation5], 1 }

</bundles_post_ra>
